<compile_context>
chip_gen: v6e
topology: v6e:2x2x1
jax: 0.10.0
libtpu: 0.0.40
codegen_flags: <defaults>
</compile_context>

<pallas_src>
import functools
from dataclasses import dataclass

import jax
import jax.numpy as jnp
from jax.experimental import pallas as pl
from jax.experimental.pallas import tpu as pltpu


# ----------------------------- config ---------------------------------------

@dataclass
class ModelArgs:
    vocab_size: int = 256
    dim: int = 64
    inter_dim: int = 128
    moe_inter_dim: int = 32
    n_layers: int = 2
    n_dense_layers: int = 1
    n_heads: int = 2
    n_routed_experts: int = 4
    n_shared_experts: int = 1
    n_activated_experts: int = 2
    score_func: str = "softmax"
    route_scale: float = 1.0
    q_lora_rank: int = 0
    kv_lora_rank: int = 32
    qk_nope_head_dim: int = 16
    qk_rope_head_dim: int = 16
    v_head_dim: int = 16
    max_seq_len: int = 16
    original_seq_len: int = 64   # > max_seq_len => no YaRN correction / mscale
    rope_theta: float = 10000.0


# ----------------------------- tiling helpers --------------------------------

def _round_up(x, m):
    return (x + m - 1) // m * m


def _pick_tile(dim, pref):
    """Return (tile, padded_dim).  Small dims become a single full-extent tile
    (legal for the (8,128) rule and needs NO padding); large dims use `pref`."""
    if dim <= pref:
        return dim, dim
    if dim % pref == 0:
        return pref, dim
    return pref, _round_up(dim, pref)


def _pad2(x, rows, cols):
    r, c = x.shape
    if r == rows and c == cols:
        return x
    return jnp.pad(x, ((0, rows - r), (0, cols - c)))


_MM_SEMANTICS = ("parallel", "parallel", "arbitrary")


# ----------------------------- matmul kernel ---------------------------------

def _matmul_kernel(a_ref, b_ref, o_ref, acc_ref):
    @pl.when(pl.program_id(2) == 0)
    def _():
        acc_ref[...] = jnp.zeros_like(acc_ref)

    acc_ref[...] += jnp.dot(a_ref[...], b_ref[...],
                            preferred_element_type=jnp.float32)

    @pl.when(pl.program_id(2) == pl.num_programs(2) - 1)
    def _():
        o_ref[...] = acc_ref[...].astype(o_ref.dtype)


def matmul(a, b, out_dtype=jnp.bfloat16, tm=256, tn=256, tk=512):
    """(M, K) @ (K, N) -> (M, N).  bf16 inputs, f32 VMEM accumulator; small dims
    use full-extent tiles so no padding / slicing is emitted at these shapes."""
    M, K = a.shape
    K2, N = b.shape
    assert K == K2
    tm, Mp = _pick_tile(M, tm)
    tn, Np = _pick_tile(N, tn)
    tk, Kp = _pick_tile(K, tk)
    a_p = _pad2(a, Mp, Kp)
    b_p = _pad2(b, Kp, Np)
    out = pl.pallas_call(
        _matmul_kernel,
        grid=(Mp // tm, Np // tn, Kp // tk),
        in_specs=[pl.BlockSpec((tm, tk), lambda i, j, k: (i, k)),
                  pl.BlockSpec((tk, tn), lambda i, j, k: (k, j))],
        out_specs=pl.BlockSpec((tm, tn), lambda i, j, k: (i, j)),
        out_shape=jax.ShapeDtypeStruct((Mp, Np), out_dtype),
        scratch_shapes=[pltpu.VMEM((tm, tn), jnp.float32)],
        compiler_params=pltpu.CompilerParams(dimension_semantics=_MM_SEMANTICS),
    )(a_p, b_p)
    if (Mp, Np) != (M, N):
        out = out[:M, :N]
    return out


# ----------------------------- norm kernels ----------------------------------

def _rmsnorm_kernel(x_ref, w_ref, o_ref, *, eps):
    x = x_ref[...].astype(jnp.float32)
    var = jnp.mean(x * x, axis=-1, keepdims=True)
    o_ref[...] = (x * jax.lax.rsqrt(var + eps) * w_ref[...]).astype(o_ref.dtype)


def rmsnorm(x, w, eps=1e-6, out_dtype=jnp.bfloat16, block_rows=256):
    N, D = x.shape
    tr, Np = _pick_tile(N, block_rows)
    x_p = _pad2(x, Np, D)
    out = pl.pallas_call(
        functools.partial(_rmsnorm_kernel, eps=eps),
        grid=(Np // tr,),
        in_specs=[pl.BlockSpec((tr, D), lambda i: (i, 0)),
                  pl.BlockSpec((1, D), lambda i: (0, 0))],
        out_specs=pl.BlockSpec((tr, D), lambda i: (i, 0)),
        out_shape=jax.ShapeDtypeStruct((Np, D), out_dtype),
        compiler_params=pltpu.CompilerParams(dimension_semantics=("parallel",)),
    )(x_p, w.reshape(1, D).astype(jnp.float32))
    return out[:N] if Np != N else out


def _add_rmsnorm_kernel(x_ref, d_ref, w_ref, h_ref, n_ref, *, eps):
    # Fused residual add + RMSNorm: saves two full HBM passes over the
    # activations per layer.  Math in f32, stores in bf16.
    s = x_ref[...].astype(jnp.float32) + d_ref[...].astype(jnp.float32)
    h_ref[...] = s.astype(h_ref.dtype)
    var = jnp.mean(s * s, axis=-1, keepdims=True)
    n_ref[...] = (s * jax.lax.rsqrt(var + eps) * w_ref[...]).astype(n_ref.dtype)


def add_rmsnorm(x, delta, w, eps=1e-6, block_rows=256):
    """Returns (x + delta, rmsnorm(x + delta, w)) in one kernel."""
    N, D = x.shape
    tr, Np = _pick_tile(N, block_rows)
    x_p = _pad2(x, Np, D)
    d_p = _pad2(delta, Np, D)
    h, n = pl.pallas_call(
        functools.partial(_add_rmsnorm_kernel, eps=eps),
        grid=(Np // tr,),
        in_specs=[pl.BlockSpec((tr, D), lambda i: (i, 0)),
                  pl.BlockSpec((tr, D), lambda i: (i, 0)),
                  pl.BlockSpec((1, D), lambda i: (0, 0))],
        out_specs=[pl.BlockSpec((tr, D), lambda i: (i, 0)),
                   pl.BlockSpec((tr, D), lambda i: (i, 0))],
        out_shape=(jax.ShapeDtypeStruct((Np, D), jnp.bfloat16),
                   jax.ShapeDtypeStruct((Np, D), jnp.bfloat16)),
        compiler_params=pltpu.CompilerParams(dimension_semantics=("parallel",)),
    )(x_p, d_p, w.reshape(1, D).astype(jnp.float32))
    if Np != N:
        h, n = h[:N], n[:N]
    return h, n


# ----------------------------- attention kernel ------------------------------

def _attn_kernel(q_ref, k_ref, v_ref, o_ref, *, scale, n_heads, qk_dim, v_dim):
    # q/k/v blocks: (1, S, H*D), token-major — no XLA transposes needed.
    # bf16 operands straight into the MXU; softmax math in f32.
    # TODO(synk): flash-style online-softmax with a KV grid axis before scaling
    # S beyond a few hundred (full SxS f32 tile per head must fit VMEM).
    S = q_ref.shape[1]
    row = jax.lax.broadcasted_iota(jnp.int32, (S, S), 0)
    col = jax.lax.broadcasted_iota(jnp.int32, (S, S), 1)
    causal = col <= row
    outs = []
    for h in range(n_heads):                      # static unroll over heads
        qh = q_ref[0, :, h * qk_dim:(h + 1) * qk_dim]   # (S, Dq) bf16
        kh = k_ref[0, :, h * qk_dim:(h + 1) * qk_dim]
        vh = v_ref[0, :, h * v_dim:(h + 1) * v_dim]     # (S, Dv) bf16
        s = jnp.dot(qh, kh.T, preferred_element_type=jnp.float32) * scale
        s = jnp.where(causal, s, -1e30)
        s = s - jnp.max(s, axis=-1, keepdims=True)
        p = jnp.exp(s)
        p = p * pl.reciprocal(jnp.sum(p, axis=-1, keepdims=True), approx=True)
        outs.append(jnp.dot(p.astype(vh.dtype), vh,
                            preferred_element_type=jnp.float32))
    # Single lane-dense store over H*dv.
    o_ref[0] = jnp.concatenate(outs, axis=-1).astype(o_ref.dtype)


def attention(q, k, v, scale, n_heads):
    """q, k: (B, S, H*Dq); v: (B, S, H*Dv).  One grid step per batch element;
    output written directly as (B, S, H*Dv)."""
    B, S, QK = q.shape
    VD = v.shape[-1]
    return pl.pallas_call(
        functools.partial(_attn_kernel, scale=scale, n_heads=n_heads,
                          qk_dim=QK // n_heads, v_dim=VD // n_heads),
        grid=(B,),
        in_specs=[pl.BlockSpec((1, S, QK), lambda b: (b, 0, 0)),
                  pl.BlockSpec((1, S, QK), lambda b: (b, 0, 0)),
                  pl.BlockSpec((1, S, VD), lambda b: (b, 0, 0))],
        out_specs=pl.BlockSpec((1, S, VD), lambda b: (b, 0, 0)),
        out_shape=jax.ShapeDtypeStruct((B, S, VD), jnp.bfloat16),
        compiler_params=pltpu.CompilerParams(dimension_semantics=("parallel",)),
    )(q, k, v)


# ----------------------------- MLP / MoE kernels -----------------------------

def _mlp_kernel(x_ref, w1_ref, w3_ref, w2_ref, o_ref):
    # Fully fused SwiGLU MLP: (silu(x@w1) * (x@w3)) @ w2 in one pass.
    # TODO(synk): at real DeepSeek inter_dim, tile the F/K dims instead of
    # holding the full weights per step.
    x = x_ref[...]
    g = jnp.dot(x, w1_ref[...], preferred_element_type=jnp.float32)
    u = jnp.dot(x, w3_ref[...], preferred_element_type=jnp.float32)
    h = (g * jax.nn.sigmoid(g) * u).astype(x.dtype)
    o_ref[...] = jnp.dot(h, w2_ref[...],
                         preferred_element_type=jnp.float32).astype(o_ref.dtype)


def mlp_forward(xf, p, block_rows=256):
    T, D = xf.shape
    F = p["w1"].shape[-1]
    tr, Tp = _pick_tile(T, block_rows)
    x_p = _pad2(xf, Tp, D)
    out = pl.pallas_call(
        _mlp_kernel,
        grid=(Tp // tr,),
        in_specs=[pl.BlockSpec((tr, D), lambda i: (i, 0)),
                  pl.BlockSpec((D, F), lambda i: (0, 0)),
                  pl.BlockSpec((D, F), lambda i: (0, 0)),
                  pl.BlockSpec((F, D), lambda i: (0, 0))],
        out_specs=pl.BlockSpec((tr, D), lambda i: (i, 0)),
        out_shape=jax.ShapeDtypeStruct((Tp, D), jnp.bfloat16),
        compiler_params=pltpu.CompilerParams(dimension_semantics=("parallel",)),
    )(x_p, p["w1"], p["w3"], p["w2"])
    return out[:T] if Tp != T else out


def _moe_kernel(x_ref, w1_ref, w3_ref, w2_ref, g_ref, o_ref, acc_ref):
    # One grid step per expert (routed experts + shared expert stacked); the
    # output block is an accumulator across the expert axis.
    e = pl.program_id(0)

    @pl.when(e == 0)
    def _():
        acc_ref[...] = jnp.zeros_like(acc_ref)

    x = x_ref[...]
    g = jnp.dot(x, w1_ref[0], preferred_element_type=jnp.float32)
    u = jnp.dot(x, w3_ref[0], preferred_element_type=jnp.float32)
    h = (g * jax.nn.sigmoid(g) * u).astype(x.dtype)
    y = jnp.dot(h, w2_ref[0], preferred_element_type=jnp.float32)
    acc_ref[...] += g_ref[0] * y           # g_ref[0]: (T, 1) f32 routing weights

    @pl.when(e == pl.num_programs(0) - 1)
    def _():
        o_ref[...] = acc_ref[...].astype(o_ref.dtype)


def moe_forward(xf, p, args: ModelArgs):
    # TODO(synk): replace the dense all-experts grid with a gathered/grouped
    # matmul (PrefetchScalarGridSpec + group offsets) so only the activated
    # experts' FLOPs / HBM traffic are spent; also tile T for large batches.
    T, D = xf.shape
    E = args.n_routed_experts
    k = args.n_activated_experts

    scores = matmul(xf, p["gate"], out_dtype=jnp.float32)        # router in f32
    probs = jax.nn.softmax(scores, axis=-1)                      # score_func == "softmax"
    topk_w, topk_idx = jax.lax.top_k(probs, k)
    W = jnp.zeros((T, E), jnp.float32)
    W = W.at[jnp.arange(T)[:, None], topk_idx].set(topk_w * args.route_scale)
    # Shared expert is stacked as expert E with routing weight 1.0.
    Wall = jnp.concatenate([W, jnp.ones((T, 1), jnp.float32)], axis=1)
    gate_cols = Wall.T.reshape(E + 1, T, 1)

    F = p["w1_stack"].shape[-1]
    out = pl.pallas_call(
        _moe_kernel,
        grid=(E + 1,),
        in_specs=[pl.BlockSpec((T, D), lambda e: (0, 0)),
                  pl.BlockSpec((1, D, F), lambda e: (e, 0, 0)),
                  pl.BlockSpec((1, D, F), lambda e: (e, 0, 0)),
                  pl.BlockSpec((1, F, D), lambda e: (e, 0, 0)),
                  pl.BlockSpec((1, T, 1), lambda e: (e, 0, 0))],
        out_specs=pl.BlockSpec((T, D), lambda e: (0, 0)),
        out_shape=jax.ShapeDtypeStruct((T, D), jnp.bfloat16),
        scratch_shapes=[pltpu.VMEM((T, D), jnp.float32)],
        compiler_params=pltpu.CompilerParams(dimension_semantics=("arbitrary",)),
    )(xf, p["w1_stack"], p["w3_stack"], p["w2_stack"], gate_cols)
    return out


# ----------------------------- model glue ------------------------------------

def precompute_freqs(args: ModelArgs):
    d = args.qk_rope_head_dim
    inv_freq = 1.0 / (args.rope_theta ** (jnp.arange(0, d, 2, dtype=jnp.float32) / d))
    t = jnp.arange(args.max_seq_len, dtype=jnp.float32)
    freqs = jnp.outer(t, inv_freq)                    # (max_seq_len, d//2)
    return jnp.cos(freqs), jnp.sin(freqs)


def apply_rotary_emb(x, cos, sin):
    """x: (B, S, H, Dr) adjacent-pair complex convention (torch.view_as_complex).
    TODO(synk): fuse RoPE into the projection/attention kernel via pltpu.roll."""
    B, S, H, Dr = x.shape
    xf = x.astype(jnp.float32).reshape(B, S, H, Dr // 2, 2)
    xr, xi = xf[..., 0], xf[..., 1]
    c = cos[None, :, None, :]
    s = sin[None, :, None, :]
    outr = xr * c - xi * s
    outi = xr * s + xi * c
    return jnp.stack([outr, outi], axis=-1).reshape(B, S, H, Dr).astype(x.dtype)


def mla_forward(x, p, cos, sin, args: ModelArgs):
    B, S, D = x.shape
    H = args.n_heads
    dn, dr, dv = args.qk_nope_head_dim, args.qk_rope_head_dim, args.v_head_dim
    qkd = dn + dr
    xf = x.reshape(B * S, D)

    # Fused wq + wkv_a projection: a single pass over the activations.
    qkv = matmul(xf, p["wq_kva"])                       # (T, H*qkd + kv_rank + dr)
    q = qkv[:, :H * qkd].reshape(B, S, H, qkd)
    kv = qkv[:, H * qkd:]
    q_nope, q_pe = q[..., :dn], q[..., dn:]
    q_pe = apply_rotary_emb(q_pe, cos, sin)

    kv_c = kv[:, :args.kv_lora_rank]
    k_pe = apply_rotary_emb(kv[:, args.kv_lora_rank:].reshape(B, S, 1, dr), cos, sin)

    kv_c = rmsnorm(kv_c, p["kv_norm"])
    kv_b = matmul(kv_c, p["wkv_b"]).reshape(B, S, H, dn + dv)
    k_nope, v = kv_b[..., :dn], kv_b[..., dn:]

    # Token-major layout straight into the attention kernel (no transposes).
    q_full = jnp.concatenate([q_nope, q_pe], axis=-1).reshape(B, S, H * qkd)
    k_full = jnp.concatenate(
        [k_nope, jnp.broadcast_to(k_pe, (B, S, H, dr))], axis=-1).reshape(B, S, H * qkd)
    v_flat = v.reshape(B, S, H * dv)

    softmax_scale = qkd ** -0.5            # no mscale (no YaRN extension here)
    o = attention(q_full, k_full, v_flat, softmax_scale, H)   # (B, S, H*dv) bf16
    return matmul(o.reshape(B * S, H * dv), p["wo"]).reshape(B, S, D)


def transformer_forward(params, input_ids, args: ModelArgs, start_pos: int = 0):
    # TODO(synk): start_pos > 0 decode needs a KV cache + shifted mask; only the
    # prefill-style forward (start_pos=0, no custom mask) is implemented.
    B, S = input_ids.shape
    D = args.dim
    T = B * S
    cos = params["cos"][start_pos:start_pos + S]
    sin = params["sin"][start_pos:start_pos + S]

    layers = params["layers"]
    r = params["embed"][input_ids].reshape(T, D)        # (T, D) bf16 gather
    n = rmsnorm(r, layers[0]["attn_norm"])              # first pre-attn norm

    for i, layer in enumerate(layers):
        attn_out = mla_forward(n.reshape(B, S, D), layer["attn"],
                               cos, sin, args).reshape(T, D)
        r, n = add_rmsnorm(r, attn_out, layer["ffn_norm"])
        if layer["ffn_type"] == "mlp":
            ffn_out = mlp_forward(n, layer["ffn"])
        else:
            ffn_out = moe_forward(n, layer["ffn"], args)
        next_w = layers[i + 1]["attn_norm"] if i + 1 < len(layers) else params["norm"]
        r, n = add_rmsnorm(r, ffn_out, next_w)          # residual + next norm (or final norm)

    logits = matmul(n, params["head"])                  # bf16 logits, f32 accumulation
    return logits.reshape(B, S, args.vocab_size)


# ----------------------------- deterministic init ----------------------------

def init_params(args: ModelArgs, key):
    keys = iter(jax.random.split(key, 512))

    def w(shape, scale=0.02):
        return (jax.random.normal(next(keys), shape, jnp.float32) * scale).astype(jnp.bfloat16)

    def pad_cols(x, cols):
        return x if x.shape[1] == cols else jnp.pad(x, ((0, 0), (0, cols - x.shape[1])))

    def pad_rows(x, rows):
        return x if x.shape[0] == rows else jnp.pad(x, ((0, rows - x.shape[0]), (0, 0)))

    qkd = args.qk_nope_head_dim + args.qk_rope_head_dim
    cos, sin = precompute_freqs(args)
    params = {
        "embed": w((args.vocab_size, args.dim)),
        "norm": jnp.ones((args.dim,), jnp.float32),
        "head": w((args.dim, args.vocab_size)),
        "cos": cos,
        "sin": sin,
        "layers": [],
    }
    for lid in range(args.n_layers):
        layer = {
            "attn_norm": jnp.ones((args.dim,), jnp.float32),
            "ffn_norm": jnp.ones((args.dim,), jnp.float32),
            "attn": {
                # wq and wkv_a fused along N at init (q_lora_rank == 0 path).
                "wq_kva": w((args.dim,
                             args.n_heads * qkd + args.kv_lora_rank + args.qk_rope_head_dim)),
                "kv_norm": jnp.ones((args.kv_lora_rank,), jnp.float32),
                "wkv_b": w((args.kv_lora_rank,
                            args.n_heads * (args.qk_nope_head_dim + args.v_head_dim))),
                "wo": w((args.n_heads * args.v_head_dim, args.dim)),
            },
        }
        if lid < args.n_dense_layers:
            layer["ffn_type"] = "mlp"
            layer["ffn"] = {
                "w1": w((args.dim, args.inter_dim)),
                "w2": w((args.inter_dim, args.dim)),
                "w3": w((args.dim, args.inter_dim)),
            }
        else:
            layer["ffn_type"] = "moe"
            E = args.n_routed_experts
            shared_dim = args.n_shared_experts * args.moe_inter_dim
            Fmax = max(args.moe_inter_dim, shared_dim)
            w1s, w3s, w2s = [], [], []
            for _ in range(E):
                w1s.append(pad_cols(w((args.dim, args.moe_inter_dim)), Fmax))
                w3s.append(pad_cols(w((args.dim, args.moe_inter_dim)), Fmax))
                w2s.append(pad_rows(w((args.moe_inter_dim, args.dim)), Fmax))
            # shared expert stacked last (zero-padded F columns/rows contribute 0)
            w1s.append(pad_cols(w((args.dim, shared_dim)), Fmax))
            w3s.append(pad_cols(w((args.dim, shared_dim)), Fmax))
            w2s.append(pad_rows(w((shared_dim, args.dim)), Fmax))
            layer["ffn"] = {
                "gate": w((args.dim, E)),
                "w1_stack": jnp.stack(w1s),     # (E+1, D, Fmax)
                "w3_stack": jnp.stack(w3s),     # (E+1, D, Fmax)
                "w2_stack": jnp.stack(w2s),     # (E+1, Fmax, D)
            }
        params["layers"].append(layer)
    return params


# ----------------------------- main -------------------------------------------

if __name__ == "__main__":
    args = ModelArgs()
    key = jax.random.PRNGKey(0)
    kp, ki = jax.random.split(key)
    params = init_params(args, kp)

    batch, seq = 2, 8
    input_ids = jax.random.randint(ki, (batch, seq), 0, args.vocab_size, dtype=jnp.int32)

    logits = transformer_forward(params, input_ids, args, start_pos=0)
    logits = jax.block_until_ready(logits)
    assert logits.shape == (batch, seq, args.vocab_size), logits.shape
    assert bool(jnp.all(jnp.isfinite(logits.astype(jnp.float32))))
    print("KERNEL_OK")
</pallas_src>

<mosaic_0001>
module attributes {stable_mosaic.version = 11 : i64} {
  func.func @_rmsnorm_kernel(%arg0: i32, %arg1: memref<16x64xbf16, #tpu.memory_space<vmem>>, %arg2: memref<1x64xf32, #tpu.memory_space<vmem>>, %arg3: memref<16x64xbf16, #tpu.memory_space<vmem>>) attributes {dimension_semantics = [#tpu.dimension_semantics<parallel>], iteration_bounds = array<i64: 1>, scalar_prefetch = 0 : i64, scratch_operands = 0 : i64, tpu.core_type = #tpu.core_type<tc>, window_params = [{transform_indices = @transform_0, window_bounds = array<i64: 16, 64>}, {pipeline_mode = #tpu.pipeline_mode<synchronous>, transform_indices = @transform_1, window_bounds = array<i64: 1, 64>}, {transform_indices = @transform_2, window_bounds = array<i64: 16, 64>}]} {
    %c0 = arith.constant 0 : index
    %c0_0 = arith.constant 0 : index
    %0 = vector.load %arg1[%c0, %c0_0] : memref<16x64xbf16, #tpu.memory_space<vmem>>, vector<16x64xbf16>
    %1 = arith.extf %0 : vector<16x64xbf16> to vector<16x64xf32>
    %2 = arith.mulf %1, %1 : vector<16x64xf32>
    %cst = arith.constant dense<0.000000e+00> : vector<16xf32>
    %3 = vector.multi_reduction <add>, %2, %cst [1] : vector<16x64xf32> to vector<16xf32>
    %4 = vector.shape_cast %3 : vector<16xf32> to vector<16x1xf32>
    %cst_1 = arith.constant 6.400000e+01 : f32
    %5 = vector.broadcast %cst_1 : f32 to vector<16x1xf32>
    %6 = arith.divf %4, %5 : vector<16x1xf32>
    %cst_2 = arith.constant 9.99999997E-7 : f32
    %7 = vector.broadcast %cst_2 : f32 to vector<16x1xf32>
    %8 = arith.addf %6, %7 : vector<16x1xf32>
    %9 = math.rsqrt %8 : vector<16x1xf32>
    %10 = vector.broadcast %9 : vector<16x1xf32> to vector<16x64xf32>
    %11 = arith.mulf %1, %10 : vector<16x64xf32>
    %c0_3 = arith.constant 0 : index
    %c0_4 = arith.constant 0 : index
    %12 = vector.load %arg2[%c0_3, %c0_4] : memref<1x64xf32, #tpu.memory_space<vmem>>, vector<1x64xf32>
    %13 = vector.broadcast %12 : vector<1x64xf32> to vector<16x64xf32>
    %14 = arith.mulf %11, %13 : vector<16x64xf32>
    %15 = arith.truncf %14 : vector<16x64xf32> to vector<16x64xbf16>
    %c0_5 = arith.constant 0 : index
    %c0_6 = arith.constant 0 : index
    %16 = vector.load %arg3[%c0_5, %c0_6] : memref<16x64xbf16, #tpu.memory_space<vmem>>, vector<16x64xbf16>
    tpu.vector_store %arg3[%c0_5, %c0_6], %15 {strides = array<i32>} : memref<16x64xbf16, #tpu.memory_space<vmem>>, vector<16x64xbf16>,
    return
  }
  func.func @transform_0(%arg0: i32) -> (i32, i32) {
    %c0_i32 = arith.constant 0 : i32
    %c0_i32_0 = arith.constant 0 : i32
    return %arg0, %c0_i32 : i32, i32
  }
  func.func @transform_1(%arg0: i32) -> (i32, i32) {
    %c0_i32 = arith.constant 0 : i32
    %c0_i32_0 = arith.constant 0 : i32
    %c0_i32_1 = arith.constant 0 : i32
    return %c0_i32, %c0_i32_0 : i32, i32
  }
  func.func @transform_2(%arg0: i32) -> (i32, i32) {
    %c0_i32 = arith.constant 0 : i32
    %c0_i32_0 = arith.constant 0 : i32
    return %arg0, %c0_i32 : i32, i32
  }
}

</mosaic_0001>

<bundles_post_ra>
// kernel: tpu_custom_call.1
= control target key start
LH: loop header
LB: loop body
LE: loop exit
PB: predicated region body
PF: predicated region fallthrough
CT: control target
= control target key end

     0   :  { %7 = vsyncpa [#allocation3], 0  ;;  %s180_s0 = inlined_call_operand.hbm [shape: bf16[16,64], index: 0, kind: input, shape index: {}]   ;;  %s181_s1 = inlined_call_operand.vmem [shape: f32[1,64], index: 1, kind: input, shape index: {}]   ;;  %s182_s2 = inlined_call_operand.hbm [shape: bf16[16,64], index: 2, kind: output, shape index: {}]  }
   0x1   :  { %8 = vsyncpa [#allocation4], 0  ;;  %s146_s9 = smov [#allocation2]  }
   0x2   :  { %s14_s10 = sshll.u32 %s146_s9, 4  ;;  %s15_s10 = int_to_ptr.vmem [resolvable:$true] %s14_s10 }
   0x3   :  { %s110_s11 = scalar_lea.vmem %s15_s10, 128  ;;  %p115_p1 = scmp.lt.s32.totalorder %s15_s10, %s15_s10 }
   0x4   :  { %p111_p0 = scmp.ne.s32.totalorder %s15_s10, %s110_s11  ;;  %p116_p2 = scmp.lt.s32.totalorder %s110_s11, %s110_s11 }
   0x6   :  { %p117_p3 = por %p116_p2, %p115_p1 }
   0x8   :  { %p118_p4 = pnand %p117_p3, %p111_p0 }
   0xa   :  { %121 = shalt.err (!%p118_p4)
}
   0xb   :  { %s147_s12 = smov 64   ;;  %s148_s13 = smov 4  }
   0xc   :  { %20 = dma.hbm_to_vmem [thread:$0]  %s180_s0, 128, %s15_s10, [#allocation3], %s147_s12, %s147_s12, %s148_s13  }
   0xd   :  { %142 = dma.done.wait [#allocation3], 128  }
   0xe   :  { %143 = vsyncadd [#allocation3], 4294967168  ;;  %v91_v0 = vld [vmem:[#allocation2] sm:$0xff]   ;;  %vm32_vm0 = vcmask 523264   ;;  %vm65_vm1 = vcmask 519168   ;;  %s149_s17 = smov [#allocation5]  }
   0xf   :  { %v92_v1 = vunpack.c.l.bf16 %v91_v0  ;;  %v93_v2 = vunpack.c.h.bf16 %v91_v0  ;;  %v85_v14 = vld [vmem:[%s181_s1] ss:$0 sm:$0xff]  ;;  %s73_s18 = sshll.u32 %s149_s17, 4  ;;  %s74_s18 = int_to_ptr.vmem [resolvable:$true] %s73_s18 }
  0x10   :  { %s122_s19 = scalar_lea.vmem %s74_s18, 128  ;;  %p127_p6 = scmp.lt.s32.totalorder %s74_s18, %s74_s18 }
  0x11   :  { %v30_v3 = vmul.f32 %v92_v1, %v92_v1  ;;  %v31_v4 = vmul.f32 %v93_v2, %v93_v2  ;;  %p123_p5 = scmp.ne.s32.totalorder %s74_s18, %s122_s19  ;;  %p128_p7 = scmp.lt.s32.totalorder %s122_s19, %s122_s19 }
  0x13   :  { %v33_v5 = vsel %vm32_vm0, %v30_v3, 0.0  ;;  %v36_v6 = vsel %vm32_vm0, %v31_v4, 0.0  ;;  %p129_p8 = por %p128_p7, %p127_p6 }
  0x14   :  { %34 = vadd.xlane.f32.xlu0 %v33_v5 }
  0x15   :  { %p130_p9 = pnand %p129_p8, %p123_p5 }
  0x18   :  { %37 = vadd.xlane.f32.xlu0 %v36_v6 }
  0x9d   :  { %v35_v7 = vpop.xlane.xlu0 %34 }
  0x9e   :  { %v40_v8 = vmul.f32 0.015625, %v35_v7 }
  0xa0   :  { %v42_v9 = vadd.f32 1e-06, %v40_v8 }
  0xa1   :  { %v38_v10 = vpop.xlane.xlu0 %37 }
  0xa2   :  { %98 = vrsqrt.f32 %v42_v9  ;;  %v41_v11 = vmul.f32 0.015625, %v38_v10 }
  0xa4   :  { %v43_v12 = vadd.f32 1e-06, %v41_v11 }
  0xa6   :  { %100 = vrsqrt.f32 %v43_v12 }
  0xaf   :  { %v99_v13 = vpop.eup %98 }
  0xb0   :  { %v46_v15 = vmul.f32 %v99_v13, %v92_v1 }
  0xb2   :  { %v55_v16 = vmul.f32 %v85_v14, %v46_v15 }
  0xb3   :  { %v101_v17 = vpop.eup %100 }
  0xb4   :  { %v47_v18 = vmul.f32 %v101_v17, %v93_v2  ;;  %v88_v19 = vpack.c.bf16 %v55_v16, %v55_v16 }
  0xb6   :  { %v56_v20 = vmul.f32 %v85_v14, %v47_v18  ;;  %66 = vst.msk [vmem:[#allocation5] sm:$0xf] %vm65_vm1, %v88_v19 }
  0xb8   :  { %v89_v21 = vpack.c.bf16 %v56_v20, %v56_v20 }
  0xba   :  { %67 = vst.msk [vmem:[#allocation5 + $0x4] sm:$0xf] %vm65_vm1, %v89_v21 }
  0xbb   :  { %133 = shalt.err (!%p130_p9)
}
  0xbc   :  { %79 = dma.vmem_to_hbm [thread:$0]  %s74_s18, 128, %s182_s2, [#allocation4], %s147_s12, %s147_s12, %s148_s13  }
  0xbd   :  { %144 = dma.done.wait [#allocation4], 128  }
  0xbe   :  { %145 = vsyncadd [#allocation4], 4294967168 }
  0xbf   :  { %83 = vsyncpa [#allocation3], 1 }
  0xc0   :  { %84 = vsyncpa [#allocation4], 1 }

</bundles_post_ra>
